<compile_context>
chip_gen: v7x
topology: tpu7x:2x2x1
jax: 0.10.0
libtpu: 0.0.40
codegen_flags: <defaults>
</compile_context>

<pallas_src>
import functools

import numpy as np
import jax
import jax.numpy as jnp
from jax.experimental import pallas as pl
from jax.experimental.pallas import tpu as pltpu


def _backproject_kernel(invk_ref, depth_ref, out_ref, *, W, S, CS):
    # invk_ref : SMEM (B*16,) f32      flattened inv_K matrices (scalar prefetch)
    # depth_ref: VMEM (1, 1, S, 128)   depth tile (S sublane-rows of 128 pixels)
    # out_ref  : VMEM (1, 4, S, 128)   output tile, rows = (X, Y, Z, 1)
    b = pl.program_id(0)
    j = pl.program_id(1)

    # 9 scalars of the 3x3 inv_K block for this batch, read from SMEM.
    base = b * 16
    k00 = invk_ref[base + 0]
    k01 = invk_ref[base + 1]
    k02 = invk_ref[base + 2]
    k10 = invk_ref[base + 4]
    k11 = invk_ref[base + 5]
    k12 = invk_ref[base + 6]
    k20 = invk_ref[base + 8]
    k21 = invk_ref[base + 9]
    k22 = invk_ref[base + 10]

    w_f = jnp.float32(W)
    inv_w = jnp.float32(1.0 / W)

    # Per-chunk-local flat offset, hoisted out of the loop (exact in f32: < CS*128 <= 2^17).
    sub = jax.lax.broadcasted_iota(jnp.int32, (CS, 128), 0)
    lane = jax.lax.broadcasted_iota(jnp.int32, (CS, 128), 1)
    within_f = (sub * 128 + lane).astype(jnp.float32)
    ones_blk = jnp.ones((CS, 128), dtype=out_ref.dtype)

    tile_row0 = j * S  # first sublane-row (of 128 pixels) covered by this tile

    def chunk(c, carry):
        c0 = pl.multiple_of(c * CS, CS)

        # Global flat pixel index as f32 (exact while padded H*W < 2^24, asserted in wrapper).
        chunk_base = ((tile_row0 + c0) * 128).astype(jnp.float32)
        idx_f = chunk_base + within_f

        # y = idx // W, x = idx % W on the VPU: reciprocal multiply plus an exact
        # two-sided +-1 floor correction (estimate error << 1 for idx < 2^24, W >= 2).
        y = jnp.floor(idx_f * inv_w)
        y = jnp.where(y * w_f > idx_f, y - 1.0, y)
        y = jnp.where((y + 1.0) * w_f <= idx_f, y + 1.0, y)
        x = idx_f - y * w_f

        d = depth_ref[0, 0, pl.ds(c0, CS), :]                        # (CS, 128)

        # Direct dense (CS, 128) row stores (no concatenate, no MXU).
        out_ref[0, 0, pl.ds(c0, CS), :] = ((k00 * x + k01 * y + k02) * d).astype(out_ref.dtype)
        out_ref[0, 1, pl.ds(c0, CS), :] = ((k10 * x + k11 * y + k12) * d).astype(out_ref.dtype)
        out_ref[0, 2, pl.ds(c0, CS), :] = ((k20 * x + k21 * y + k22) * d).astype(out_ref.dtype)
        out_ref[0, 3, pl.ds(c0, CS), :] = ones_blk
        return carry

    jax.lax.fori_loop(0, S // CS, chunk, 0, unroll=True)


def _choose_sublane_tile(R, target_S):
    """Pick the sublane tile S (rows of 128 px).  Prefer S dividing R (no pad/slice).

    Returns (S, R_pad).  If S < R_pad, S is a multiple of 8 (TPU tiling constraint)."""
    if R <= target_S:
        return R, R                                   # single full block along the row axis
    top = (target_S // 8) * 8
    best = 0
    for d in range(top, 0, -8):                       # largest multiple-of-8 divisor <= target
        if R % d == 0:
            best = d
            break
    if best and best * 4 >= target_S:                 # good enough divisor -> no padding
        return best, R
    S = max(8, top)                                   # fall back to padding the row count
    return S, pl.cdiv(R, S) * S


def backproject_depth(depth, inv_K, *, target_pixels_per_step=131072):
    """depth: (B, 1, H, W) f32, inv_K: (B, 4, 4) f32 -> (B, 4, H*W) f32."""
    B, C, H, W = depth.shape
    assert C == 1
    HW = H * W

    R = pl.cdiv(HW, 128)                              # sublane-rows of 128 pixels
    target_S = max(1, target_pixels_per_step // 128)
    S, R_pad = _choose_sublane_tile(R, target_S)

    # Keep at least 2 grid steps when possible (v7x has 2 TensorCores per chip).
    if B * (R_pad // S) < 2 and S % 16 == 0:
        S //= 2

    HW_pad = R_pad * 128
    # f32 flat-index exactness bound.
    # TODO(synk): for images with >= 2^24 pixels, switch to an int32 (row, col) index path.
    assert HW_pad < (1 << 24), "BackprojectDepth Pallas kernel assumes H*W < 2^24 pixels"

    depth_flat = depth.reshape(B, 1, HW).astype(jnp.float32)
    if HW_pad != HW:
        depth_flat = jnp.pad(depth_flat, ((0, 0), (0, 0), (0, HW_pad - HW)))
    depth_rows = depth_flat.reshape(B, 1, R_pad, 128)             # free reshape (row-major)
    invk_flat = inv_K.astype(jnp.float32).reshape(B * 16)

    # Chunk size (sublanes) for the in-kernel strip-mining loop; must divide S.
    CS = next(c for c in (64, 32, 16, 8, 4, 2, 1) if S % c == 0)

    grid = (B, R_pad // S)
    kernel = functools.partial(_backproject_kernel, W=W, S=S, CS=CS)

    out = pl.pallas_call(
        kernel,
        out_shape=jax.ShapeDtypeStruct((B, 4, R_pad, 128), jnp.float32),
        grid_spec=pltpu.PrefetchScalarGridSpec(
            num_scalar_prefetch=1,                     # inv_K scalars land in SMEM
            grid=grid,
            in_specs=[
                pl.BlockSpec((1, 1, S, 128), lambda b, j, invk: (b, 0, j, 0)),   # depth tile
            ],
            out_specs=pl.BlockSpec((1, 4, S, 128), lambda b, j, invk: (b, 0, j, 0)),
        ),
        compiler_params=pltpu.CompilerParams(
            dimension_semantics=("parallel", "parallel")
        ),
        cost_estimate=pl.CostEstimate(
            flops=20 * B * HW_pad, transcendentals=0, bytes_accessed=20 * B * HW_pad
        ),
    )(invk_flat, depth_rows)

    out = out.reshape(B, 4, HW_pad)                    # free reshape (same bytes)
    if HW_pad != HW:
        out = out[:, :, :HW]
    return out


def backproject_depth_ref(depth, inv_K):
    """Pure-JAX reference reproducing the PyTorch module exactly (no MXU, exact f32)."""
    B, _, H, W = depth.shape
    HW = H * W
    xs, ys = np.meshgrid(range(W), range(H), indexing="xy")
    pix = np.stack([xs.reshape(-1), ys.reshape(-1)], axis=0).astype(np.float32)   # (2, HW)
    pix = np.concatenate([pix, np.ones((1, HW), np.float32)], axis=0)             # (3, HW)
    pix = jnp.asarray(np.broadcast_to(pix[None], (B, 3, HW)).copy())
    d = depth.reshape(B, 1, HW).astype(jnp.float32)
    # inv_K[:, :3, :3] @ pix, done elementwise to avoid any matmul-precision ambiguity.
    cam = jnp.sum(inv_K[:, :3, :3, None].astype(jnp.float32) * pix[:, None, :, :], axis=2)
    cam = d * cam
    ones = jnp.ones((B, 1, HW), jnp.float32)
    return jnp.concatenate([cam, ones], axis=1)


def _make_inputs(key, batch_size, height, width):
    k_depth, k_invk = jax.random.split(key)
    depth = jax.random.uniform(k_depth, (batch_size, 1, height, width),
                               dtype=jnp.float32, minval=0.1, maxval=10.0)
    fx, fy = 50.0, 50.0
    cx, cy = (width - 1) / 2.0, (height - 1) / 2.0
    inv_K_base = np.array(
        [[1.0 / fx, 0.0, -cx / fx, 0.0],
         [0.0, 1.0 / fy, -cy / fy, 0.0],
         [0.0, 0.0, 1.0, 0.0],
         [0.0, 0.0, 0.0, 1.0]], dtype=np.float32)
    inv_K = jnp.asarray(np.broadcast_to(inv_K_base[None], (batch_size, 4, 4)).copy())
    inv_K = inv_K + 1e-3 * jax.random.normal(k_invk, (batch_size, 4, 4), dtype=jnp.float32)
    return depth, inv_K


if __name__ == "__main__":
    key = jax.random.PRNGKey(0)
    k0, k1 = jax.random.split(key)

    # Primary small config (matches the module: batch=2, H=W=16).
    batch_size, height, width = 2, 16, 16
    depth, inv_K = _make_inputs(k0, batch_size, height, width)
    out = jax.block_until_ready(backproject_depth(depth, inv_K))
    ref = backproject_depth_ref(depth, inv_K)
    assert out.shape == (batch_size, 4, height * width)
    np.testing.assert_allclose(np.asarray(out), np.asarray(ref), rtol=1e-5, atol=1e-5)

    # Secondary check with a width that does not divide 128 (exercises the floor/mod path).
    depth2, inv_K2 = _make_inputs(k1, 1, 24, 96)
    out2 = jax.block_until_ready(backproject_depth(depth2, inv_K2))
    ref2 = backproject_depth_ref(depth2, inv_K2)
    np.testing.assert_allclose(np.asarray(out2), np.asarray(ref2), rtol=1e-5, atol=1e-5)

    print("KERNEL_OK")
</pallas_src>

<mosaic_0001>
module attributes {stable_mosaic.version = 11 : i64} {
  func.func @_backproject_kernel(%arg0: i32, %arg1: i32, %arg2: memref<32xf32, #tpu.memory_space<smem>>, %arg3: memref<1x1x2x128xf32, #tpu.memory_space<vmem>>, %arg4: memref<1x4x2x128xf32, #tpu.memory_space<vmem>>) attributes {dimension_semantics = [#tpu.dimension_semantics<parallel>, #tpu.dimension_semantics<parallel>], iteration_bounds = array<i64: 2, 1>, scalar_prefetch = 1 : i64, scratch_operands = 0 : i64, tpu.core_type = #tpu.core_type<tc>, window_params = [{transform_indices = @transform_0, window_bounds = array<i64: 1, 1, 2, 128>}, {transform_indices = @transform_1, window_bounds = array<i64: 1, 4, 2, 128>}]} {
    %c16_i32 = arith.constant 16 : i32
    %0 = arith.muli %arg0, %c16_i32 : i32
    %c0_i32 = arith.constant 0 : i32
    %1 = arith.addi %0, %c0_i32 : i32
    %2 = arith.index_cast %1 : i32 to index
    %3 = memref.load %arg2[%2] : memref<32xf32, #tpu.memory_space<smem>>
    %c1_i32 = arith.constant 1 : i32
    %4 = arith.addi %0, %c1_i32 : i32
    %5 = arith.index_cast %4 : i32 to index
    %6 = memref.load %arg2[%5] : memref<32xf32, #tpu.memory_space<smem>>
    %c2_i32 = arith.constant 2 : i32
    %7 = arith.addi %0, %c2_i32 : i32
    %8 = arith.index_cast %7 : i32 to index
    %9 = memref.load %arg2[%8] : memref<32xf32, #tpu.memory_space<smem>>
    %c4_i32 = arith.constant 4 : i32
    %10 = arith.addi %0, %c4_i32 : i32
    %11 = arith.index_cast %10 : i32 to index
    %12 = memref.load %arg2[%11] : memref<32xf32, #tpu.memory_space<smem>>
    %c5_i32 = arith.constant 5 : i32
    %13 = arith.addi %0, %c5_i32 : i32
    %14 = arith.index_cast %13 : i32 to index
    %15 = memref.load %arg2[%14] : memref<32xf32, #tpu.memory_space<smem>>
    %c6_i32 = arith.constant 6 : i32
    %16 = arith.addi %0, %c6_i32 : i32
    %17 = arith.index_cast %16 : i32 to index
    %18 = memref.load %arg2[%17] : memref<32xf32, #tpu.memory_space<smem>>
    %c8_i32 = arith.constant 8 : i32
    %19 = arith.addi %0, %c8_i32 : i32
    %20 = arith.index_cast %19 : i32 to index
    %21 = memref.load %arg2[%20] : memref<32xf32, #tpu.memory_space<smem>>
    %c9_i32 = arith.constant 9 : i32
    %22 = arith.addi %0, %c9_i32 : i32
    %23 = arith.index_cast %22 : i32 to index
    %24 = memref.load %arg2[%23] : memref<32xf32, #tpu.memory_space<smem>>
    %c10_i32 = arith.constant 10 : i32
    %25 = arith.addi %0, %c10_i32 : i32
    %26 = arith.index_cast %25 : i32 to index
    %27 = memref.load %arg2[%26] : memref<32xf32, #tpu.memory_space<smem>>
    %28 = tpu.iota {dimensions = array<i32: 0>} : vector<2x128xi32>
    %29 = tpu.iota {dimensions = array<i32: 1>} : vector<2x128xi32>
    %c128_i32 = arith.constant 128 : i32
    %30 = vector.broadcast %c128_i32 : i32 to vector<2x128xi32>
    %31 = arith.muli %28, %30 : vector<2x128xi32>
    %32 = arith.addi %31, %29 : vector<2x128xi32>
    %33 = arith.sitofp %32 : vector<2x128xi32> to vector<2x128xf32>
    %cst = arith.constant 1.000000e+00 : f32
    %34 = vector.broadcast %cst : f32 to vector<2x128xf32>
    %c2_i32_0 = arith.constant 2 : i32
    %35 = arith.muli %arg1, %c2_i32_0 : i32
    %cst_1 = arith.constant 6.250000e-02 : f32
    %cst_2 = arith.constant 1.600000e+01 : f32
    %c0_i32_3 = arith.constant 0 : i32
    %c2_i32_4 = arith.constant 2 : i32
    %36 = arith.muli %c0_i32_3, %c2_i32_4 : i32
    %37 = tpu.assume_multiple %36, 2 : i32
    %38 = arith.addi %35, %37 : i32
    %c128_i32_5 = arith.constant 128 : i32
    %39 = arith.muli %38, %c128_i32_5 : i32
    %40 = arith.sitofp %39 : i32 to f32
    %41 = vector.broadcast %40 : f32 to vector<2x128xf32>
    %42 = arith.addf %41, %33 : vector<2x128xf32>
    %43 = vector.broadcast %cst_1 : f32 to vector<2x128xf32>
    %44 = arith.mulf %42, %43 : vector<2x128xf32>
    %45 = math.floor %44 : vector<2x128xf32>
    %46 = vector.broadcast %cst_2 : f32 to vector<2x128xf32>
    %47 = arith.mulf %45, %46 : vector<2x128xf32>
    %48 = arith.cmpf ogt, %47, %42 : vector<2x128xf32>
    %cst_6 = arith.constant 1.000000e+00 : f32
    %49 = vector.broadcast %cst_6 : f32 to vector<2x128xf32>
    %50 = arith.subf %45, %49 : vector<2x128xf32>
    %51 = arith.select %48, %50, %45 : vector<2x128xi1>, vector<2x128xf32>
    %cst_7 = arith.constant 1.000000e+00 : f32
    %52 = vector.broadcast %cst_7 : f32 to vector<2x128xf32>
    %53 = arith.addf %51, %52 : vector<2x128xf32>
    %54 = vector.broadcast %cst_2 : f32 to vector<2x128xf32>
    %55 = arith.mulf %53, %54 : vector<2x128xf32>
    %56 = arith.cmpf ole, %55, %42 : vector<2x128xf32>
    %cst_8 = arith.constant 1.000000e+00 : f32
    %57 = vector.broadcast %cst_8 : f32 to vector<2x128xf32>
    %58 = arith.addf %51, %57 : vector<2x128xf32>
    %59 = arith.select %56, %58, %51 : vector<2x128xi1>, vector<2x128xf32>
    %60 = vector.broadcast %cst_2 : f32 to vector<2x128xf32>
    %61 = arith.mulf %59, %60 : vector<2x128xf32>
    %62 = arith.subf %42, %61 : vector<2x128xf32>
    %c0 = arith.constant 0 : index
    %c0_9 = arith.constant 0 : index
    %63 = arith.index_cast %37 : i32 to index
    %c0_10 = arith.constant 0 : index
    %64 = vector.load %arg3[%c0, %c0_9, %63, %c0_10] : memref<1x1x2x128xf32, #tpu.memory_space<vmem>>, vector<1x1x2x128xf32>
    %65 = vector.shape_cast %64 : vector<1x1x2x128xf32> to vector<2x128xf32>
    %66 = vector.broadcast %3 : f32 to vector<2x128xf32>
    %67 = arith.mulf %66, %62 : vector<2x128xf32>
    %68 = vector.broadcast %6 : f32 to vector<2x128xf32>
    %69 = arith.mulf %68, %59 : vector<2x128xf32>
    %70 = arith.addf %67, %69 : vector<2x128xf32>
    %71 = vector.broadcast %9 : f32 to vector<2x128xf32>
    %72 = arith.addf %70, %71 : vector<2x128xf32>
    %73 = arith.mulf %72, %65 : vector<2x128xf32>
    %c0_11 = arith.constant 0 : index
    %c0_12 = arith.constant 0 : index
    %74 = arith.index_cast %37 : i32 to index
    %c0_13 = arith.constant 0 : index
    %75 = vector.load %arg4[%c0_11, %c0_12, %74, %c0_13] : memref<1x4x2x128xf32, #tpu.memory_space<vmem>>, vector<1x1x2x128xf32>
    %76 = vector.shape_cast %75 : vector<1x1x2x128xf32> to vector<2x128xf32>
    %77 = vector.shape_cast %73 : vector<2x128xf32> to vector<1x1x2x128xf32>
    tpu.vector_store %arg4[%c0_11, %c0_12, %74, %c0_13], %77 {strides = array<i32>} : memref<1x4x2x128xf32, #tpu.memory_space<vmem>>, vector<1x1x2x128xf32>,
    %78 = vector.broadcast %12 : f32 to vector<2x128xf32>
    %79 = arith.mulf %78, %62 : vector<2x128xf32>
    %80 = vector.broadcast %15 : f32 to vector<2x128xf32>
    %81 = arith.mulf %80, %59 : vector<2x128xf32>
    %82 = arith.addf %79, %81 : vector<2x128xf32>
    %83 = vector.broadcast %18 : f32 to vector<2x128xf32>
    %84 = arith.addf %82, %83 : vector<2x128xf32>
    %85 = arith.mulf %84, %65 : vector<2x128xf32>
    %c0_14 = arith.constant 0 : index
    %c1 = arith.constant 1 : index
    %86 = arith.index_cast %37 : i32 to index
    %c0_15 = arith.constant 0 : index
    %87 = vector.load %arg4[%c0_14, %c1, %86, %c0_15] : memref<1x4x2x128xf32, #tpu.memory_space<vmem>>, vector<1x1x2x128xf32>
    %88 = vector.shape_cast %87 : vector<1x1x2x128xf32> to vector<2x128xf32>
    %89 = vector.shape_cast %85 : vector<2x128xf32> to vector<1x1x2x128xf32>
    tpu.vector_store %arg4[%c0_14, %c1, %86, %c0_15], %89 {strides = array<i32>} : memref<1x4x2x128xf32, #tpu.memory_space<vmem>>, vector<1x1x2x128xf32>,
    %90 = vector.broadcast %21 : f32 to vector<2x128xf32>
    %91 = arith.mulf %90, %62 : vector<2x128xf32>
    %92 = vector.broadcast %24 : f32 to vector<2x128xf32>
    %93 = arith.mulf %92, %59 : vector<2x128xf32>
    %94 = arith.addf %91, %93 : vector<2x128xf32>
    %95 = vector.broadcast %27 : f32 to vector<2x128xf32>
    %96 = arith.addf %94, %95 : vector<2x128xf32>
    %97 = arith.mulf %96, %65 : vector<2x128xf32>
    %c0_16 = arith.constant 0 : index
    %c2 = arith.constant 2 : index
    %98 = arith.index_cast %37 : i32 to index
    %c0_17 = arith.constant 0 : index
    %99 = vector.load %arg4[%c0_16, %c2, %98, %c0_17] : memref<1x4x2x128xf32, #tpu.memory_space<vmem>>, vector<1x1x2x128xf32>
    %100 = vector.shape_cast %99 : vector<1x1x2x128xf32> to vector<2x128xf32>
    %101 = vector.shape_cast %97 : vector<2x128xf32> to vector<1x1x2x128xf32>
    tpu.vector_store %arg4[%c0_16, %c2, %98, %c0_17], %101 {strides = array<i32>} : memref<1x4x2x128xf32, #tpu.memory_space<vmem>>, vector<1x1x2x128xf32>,
    %c0_18 = arith.constant 0 : index
    %c3 = arith.constant 3 : index
    %102 = arith.index_cast %37 : i32 to index
    %c0_19 = arith.constant 0 : index
    %103 = vector.load %arg4[%c0_18, %c3, %102, %c0_19] : memref<1x4x2x128xf32, #tpu.memory_space<vmem>>, vector<1x1x2x128xf32>
    %104 = vector.shape_cast %103 : vector<1x1x2x128xf32> to vector<2x128xf32>
    %105 = vector.shape_cast %34 : vector<2x128xf32> to vector<1x1x2x128xf32>
    tpu.vector_store %arg4[%c0_18, %c3, %102, %c0_19], %105 {strides = array<i32>} : memref<1x4x2x128xf32, #tpu.memory_space<vmem>>, vector<1x1x2x128xf32>,
    %c1_i32_20 = arith.constant 1 : i32
    return
  }
  func.func @transform_0(%arg0: i32, %arg1: i32, %arg2: memref<32xf32, #tpu.memory_space<smem>>) -> (i32, i32, i32, i32) {
    %c0_i32 = arith.constant 0 : i32
    %c0_i32_0 = arith.constant 0 : i32
    %c0_i32_1 = arith.constant 0 : i32
    return %arg0, %c0_i32, %arg1, %c0_i32_0 : i32, i32, i32, i32
  }
  func.func @transform_1(%arg0: i32, %arg1: i32, %arg2: memref<32xf32, #tpu.memory_space<smem>>) -> (i32, i32, i32, i32) {
    %c0_i32 = arith.constant 0 : i32
    %c0_i32_0 = arith.constant 0 : i32
    %c0_i32_1 = arith.constant 0 : i32
    return %arg0, %c0_i32, %arg1, %c0_i32_0 : i32, i32, i32, i32
  }
}

</mosaic_0001>

<bundles_post_ra>
// kernel: tpu_custom_call.1
= control target key start
LH: loop header
LB: loop body
LE: loop exit
PB: predicated region body
PF: predicated region fallthrough
CT: control target
= control target key end

     0   :  { %s765_s0 = inlined_call_operand.hbm [shape: f32[32], index: 0, kind: input, shape index: {}]   ;;  %s766_s1 = inlined_call_operand.hbm [shape: f32[2,1,2,128], index: 1, kind: input, shape index: {}]   ;;  %s767_s2 = inlined_call_operand.hbm [shape: f32[2,4,2,128], index: 2, kind: output, shape index: {}]  }
   0x1   :  { %770 = sst [smem:[#allocation12_spill]] %s766_s1  ;;  %s420_s11 = scalar_lea.hbm %s765_s0, 16 }
   0x2   :  { %p421_p0 = scmp.ne.s32.totalorder %s765_s0, %s420_s11  ;;  %p424_p1 = scmp.lt.u32.totalorder %s420_s11, %s765_s0 }
   0x4   :  { %p426_p2 = pnand %p424_p1, %p421_p0 }
   0x6   :  { %429 = shalt.err (!%p426_p2)  }
   0x7   :  { %s546_s16 = smov [#allocation3]  }
   0x8   :  { %8 = dma.hbm_to_smem %s765_s0, 16, %s546_s16, [#allocation2] }
   0x9   :  { %512 = dma.done.wait [#allocation2], 16 }
   0xa   :  { %513 = vsyncadd [#allocation2], 4294967280 }
   0xb   :  { %10 = sfence }
   0xc   :  { %11 = vsyncpa [#allocation5], 0 }
   0xd   :  { %13 = vsyncpa [#allocation5 + $0x1], 0 }
   0xe   :  { %14 = vsyncpa [#allocation6], 0 }
   0xf   :  { %16 = vsyncpa [#allocation6 + $0x1], 0  ;;  %s579_s19 = smov 0   ;;  %s581_s20 = smov 0  }
  0x10   :  { %s583_s21 = smov 0   ;;  %s585_s22 = smov 0  }
  0x11   :  { %s587_s23 = smov 0   ;;  %s589_s24 = smov 0  }
  0x12 LB: > { %s334_s0 = sadd.s32 4294967295, %s544_s24   ;;  %s335_s25 = sadd.s32 4294967294, %s544_s24   ;;  %s544_s24 = sphi %s589_s24, %s22_s24   ;;  %s540_s23 = sphi %s587_s23, %s788_s23   ;;  %s536_s22 = sphi %s585_s22, %s787_s22   ;;  %s532_s21 = sphi %s583_s21, %s786_s21   ;;  %s528_s20 = sphi %s581_s20, %s785_s20   ;;  %s524_s19 = sphi %s579_s19, %s784_s19  }
  0x13   : > { %s34_s26 = sadd.s32 1, %s540_s23  ;;  %s43_s27 = sadd.s32 1, %s532_s21 }
  0x14   : > { %p36_p3 = scmp.ge.s32.totalorder %s34_s26, 2  ;;  %p50_p4 = scmp.ne.s32.totalorder %s532_s21, %s528_s20 }
  0x15   : > { %p51_p5 = scmp.eq.s32.totalorder %s544_s24, 0  ;;  %p56_p6 = scmp.ne.s32.totalorder %s528_s20, %s524_s19 }
  0x16   : > { %s790_s26 = smov (%p36_p3, %s34_s26), 0  ;;  %p57_p8 = scmp.eq.s32.totalorder %s334_s0, 0 }
  0x17   : > { %771 = sst [smem:[#allocation11_spill]] %s790_s26  ;;  %p620_p7 = por %p51_p5, %p50_p4 }
  0x18   : > { %s38_s29 = ssub.s32 %s540_s23, %s790_s26  ;;  %p82_p9 = scmp.eq.s32.totalorder %s334_s0, 1 }
  0x19   : > { %p41_p10 = scmp.eq.s32.totalorder %s38_s29, 0  ;;  %p626_p11 = por %p57_p8, %p56_p6 }
  0x1a   : > { %p630_p12 = por %p82_p9, %p50_p4  ;;  %p88_p13 = scmp.eq.s32.totalorder %s335_s25, 1 }
  0x1b   : > { %s635_s4 = scalar_select %p41_p10, %s532_s21, %s43_s27  }
  0x1c   : > { %s774_s3 = scalar_select %p630_p12, 1, 0 }
  0x1d   : > { %p637_p0 = por %p88_p13, %p56_p6  ;;  %p366_p2 = scmp.lt.s32.totalorder %s544_s24, 2 }
  0x1e   : > { %s108_s6 = sand.u32 1, %s532_s21   ;;  %s339_s8 = sshll.u32 %s540_s23, 5 }
  0x1f   : > { %s775_s5 = scalar_select %p637_p0, 1, 0 }
  0x20   : > { %s338_s7 = sshll.u32 %s108_s6, 1  ;;  %s776_s1 = sld [smem:[#allocation12_spill]] }
  0x21   : > { %s112_s12 = scalar_lea.vmem [#allocation4], %s338_s7  ;;  %p654_p3 = pnand %p366_p2, %p620_p7 }
  0x22   : > { %s120_s13 = sshll.u32 %s112_s12, 4  ;;  %s109_s15 = scalar_lea.sflag [#allocation5], %s108_s6  ;;  %s650_s13 = int_to_ptr.vmem [resolvable:$true] %s120_s13 }
  0x23   : > { %p432_p8 = pneg %p654_p3 }
  0x26   : > { %s648_s11 = scalar_lea.hbm %s776_s1, %s339_s8  ;;  %s435_s0 = scalar_lea.hbm %s776_s1, 64 }
  0x27   : > { %s430_s16 = scalar_lea.hbm %s648_s11, 32  ;;  %p436_p7 = scmp.lt.u32.totalorder %s648_s11, %s776_s1 }
  0x28   : > { %p431_p6 = scmp.ne.s32.totalorder %s648_s11, %s430_s16  ;;  %p437_p13 = scmp.lt.u32.totalorder %s435_s0, %s430_s16 }
  0x29   : > { %p439_p1 = scmp.lt.u32.totalorder %s430_s16, %s648_s11 }
  0x2a   : > { %p433_p9 = pnand %p432_p8, %p431_p6  ;;  %p438_p2 = por %p437_p13, %p436_p7 }
  0x2c   : > { %p434_p10 = pneg %p433_p9  ;;  %p440_p4 = por %p439_p1, %p438_p2 }
  0x2e   : > { %p441_p5 = pnand %p440_p4, %p434_p10 }
  0x30   : > { %444 = shalt.err (!%p441_p5)
}
  0x31   : > { %s445_s28 = scalar_lea.vmem %s650_s13, 32  ;;  %s547_s29 = smov [#allocation4]  }
  0x32   : > { %p446_p6 = scmp.ne.s32.totalorder %s650_s13, %s445_s28  ;;  %s450_s6 = sshll.u32 %s547_s29, 4  ;;  %s451_s6 = int_to_ptr.vmem [resolvable:$false] %s450_s6 }
  0x33   : > { %s452_s7 = scalar_lea.vmem %s451_s6, 64  ;;  %p453_p12 = scmp.lt.s32.totalorder %s650_s13, %s451_s6 }
  0x34   : > { %p448_p9 = pnand %p446_p6, %p432_p8  ;;  %p454_p7 = scmp.lt.s32.totalorder %s452_s7, %s445_s28 }
  0x36   : > { %p449_p0 = pneg %p448_p9  ;;  %p455_p13 = por %p454_p7, %p453_p12 }
  0x38   : > { %p456_p1 = pnand %p455_p13, %p449_p0 }
  0x3a   : > { %459 = shalt.err (!%p456_p1)
}
  0x3b   : > { %361 = dma.hbm_to_vmem [thread:$0]  (!%p654_p3), %s648_s11, 32, %s650_s13, %s109_s15  }
  0x3c   : > { %p778_p4 = scmp.lt.s32.totalorder %s544_s24, 3  ;;  %p779_p5 = scmp.ge.s32.totalorder %s544_s24, 1 }
  0x3e   : > { %p126_p8 = pnand %p779_p5, %p778_p4 }
  0x3f   : > { %s690_s8 = sand.u32 (!%p126_p8), 1, %s528_s20  }
  0x40   : > { %129 = sbr.rel (%p126_p8) target bundleno = 124 (0x7c), region = 24  ;;  %s341_s9 = sshll.u32 (!%p126_p8), %s690_s8, 1 }
  0x41   : > { %s132_s10 = scalar_lea.sflag (!%p126_p8), [#allocation5], %s690_s8  ;;  %s694_s12 = scalar_lea.vmem (!%p126_p8), [#allocation4], %s341_s9 }
  0x47   : > { %515 = dma.done.wait (%p626_p11), %s132_s10, 32  }
  0x48   : > { %517 = vsyncadd (%p626_p11), %s132_s10, 4294967264  ;;  %s342_s11 = sshll.u32 %s690_s8, 3  ;;  %v172_v0 = vlaneseq  ;;  %v548_v3 = vmov 1.0   ;;  %s343_s14 = sshll.u32 %s536_s22, 4  ;;  %v197_v35 = vld [vmem:[%s694_s12] sm:$0x3] }
  0x49   : > { %s701_s13 = scalar_lea.vmem [#allocation7], %s342_s11  ;;  %s156_s15 = sadd.s32 1, %s343_s14 }
  0x4a   : > { %v173_v1 = vshrl.u32 %v172_v0, 7  ;;  %v175_v2 = vand.u32 127, %v172_v0  ;;  %347 = vst [vmem:[%s701_s13 + $0x6] sm:$0x3] %v548_v3  ;;  %s162_s30 = sadd.s32 5, %s343_s14  ;;  %s168_s16 = sadd.s32 9, %s343_s14 }
  0x4b   : > { %s157_s17 = sld [smem:[#allocation3 + %s156_s15]]  ;;  %s160_s18 = sadd.s32 4, %s343_s14 }
  0x4c   : > { %v176_v4 = vmul.u32 128, %v173_v1  ;;  %s166_s0 = sadd.s32 8, %s343_s14  ;;  %s163_s25 = sld [smem:[#allocation3 + %s162_s30]] }
  0x4d   : > { %s169_s27 = sld [smem:[#allocation3 + %s168_s16]]  ;;  %s158_s29 = sadd.s32 2, %s343_s14 }
  0x4e   : > { %v177_v5 = vadd.s32 %v176_v4, %v175_v2  ;;  %s155_s28 = sld [smem:[#allocation3 + %s343_s14]]  ;;  %s164_s9 = sadd.s32 6, %s343_s14 }
  0x4f   : > { %s161_s6 = sld [smem:[#allocation3 + %s160_s18]]  ;;  %s170_s10 = sadd.s32 10, %s343_s14 }
  0x50   : > { %v178_v6 = vcvt.s32.f32 %v177_v5  ;;  %s167_s7 = sld [smem:[#allocation3 + %s166_s0]]  ;;  %s247_s14 = sshll.u32 %s701_s13, 4  ;;  %s708_s14 = int_to_ptr.vmem [resolvable:$true] %s247_s14 }
  0x51   : > { %s159_s11 = sld [smem:[#allocation3 + %s158_s29]]  ;;  %v200_v15 = vstv %s157_s17  ;;  %s353_s15 = sshll.u32 %s536_s22, 7 }
  0x52   : > { %v185_v7 = vmul.f32 0.0625, %v178_v6  ;;  %s165_s1 = sld [smem:[#allocation3 + %s164_s9]]  ;;  %v209_v16 = vstv %s163_s25  ;;  %s233_s22 = scalar_lea.sflag [#allocation6], %s690_s8 }
  0x53   : > { %s171_s26 = sld [smem:[#allocation3 + %s170_s10]]  ;;  %v220_v17 = vstv %s169_s27  ;;  %p780_p12 = scmp.ne.s32.totalorder %s774_s3, 0 }
  0x54   : > { %v186_v8 = vfloor.f32 %v185_v7  ;;  %v198_v19 = vstv %s155_s28  ;;  %s549_s12 = smov [#allocation7]  }
  0x55   : > { %v207_v20 = vstv %s161_s6  ;;  %s464_s17 = sshll.u32 %s549_s12, 4  ;;  %s465_s17 = int_to_ptr.vmem [resolvable:$false] %s464_s17 }
  0x56   : > { %v187_v9 = vmul.f32 16.0, %v186_v8  ;;  %v344_v10 = vadd.f32 -1.0, %v186_v8  ;;  %v218_v21 = vstv %s167_s7  ;;  %s466_s18 = scalar_lea.vmem %s465_s17, 256  ;;  %p467_p10 = scmp.lt.s32.totalorder %s708_s14, %s465_s17 }
  0x57   : > { %v203_v29 = vstv %s159_s11 }
  0x58   : > { %vm188_vm0 = vcmp.gt.f32.partialorder %v187_v9, %v178_v6  ;;  %v212_v30 = vstv %s165_s1  ;;  %s713_s1 = scalar_lea.hbm %s767_s2, %s353_s15 }
  0x59   : > { %v190_v11 = vsel %vm188_vm0, %v344_v10, %v186_v8  ;;  %v223_v31 = vstv %s171_s26  ;;  %s460_s26 = scalar_lea.vmem %s708_s14, 128 }
  0x5a   : > { %v191_v12 = vadd.f32 1.0, %v190_v11  ;;  %p461_p11 = scmp.ne.s32.totalorder %s708_s14, %s460_s26  ;;  %p468_p2 = scmp.lt.s32.totalorder %s466_s18, %s460_s26 }
  0x5c   : > { %v192_v13 = vmul.f32 16.0, %v191_v12  ;;  %p462_p0 = pnand %p461_p11, %p780_p12  ;;  %p469_p6 = por %p468_p2, %p467_p10 }
  0x5e   : > { %vm193_vm1 = vcmp.le.f32.partialorder %v192_v13, %v178_v6  ;;  %p463_p3 = pneg %p462_p0 }
  0x5f   : > { %v194_v14 = vsel %vm193_vm1, %v191_v12, %v190_v11 }
  0x60   : > { %v195_v18 = vmul.f32 16.0, %v194_v14  ;;  %v201_v23 = vmul.f32 %v200_v15, %v194_v14  ;;  %v210_v24 = vmul.f32 %v209_v16, %v194_v14  ;;  %v221_v25 = vmul.f32 %v220_v17, %v194_v14  ;;  %p470_p9 = pnand %p469_p6, %p463_p3 }
  0x62   : > { %v196_v22 = vsub.f32 %v178_v6, %v195_v18 }
  0x64   : > { %v199_v26 = vmul.f32 %v198_v19, %v196_v22  ;;  %v208_v27 = vmul.f32 %v207_v20, %v196_v22  ;;  %v219_v28 = vmul.f32 %v218_v21, %v196_v22 }
  0x66   : > { %v202_v32 = vadd.f32 %v201_v23, %v199_v26  ;;  %v211_v33 = vadd.f32 %v210_v24, %v208_v27  ;;  %v222_v34 = vadd.f32 %v221_v25, %v219_v28 }
  0x68   : > { %v204_v36 = vadd.f32 %v203_v29, %v202_v32  ;;  %v213_v37 = vadd.f32 %v212_v30, %v211_v33  ;;  %v224_v38 = vadd.f32 %v223_v31, %v222_v34 }
  0x6a   : > { %v205_v39 = vmul.f32 %v204_v36, %v197_v35  ;;  %v214_v40 = vmul.f32 %v213_v37, %v197_v35  ;;  %v225_v41 = vmul.f32 %v224_v38, %v197_v35 }
  0x6c   : > { %206 = vst [vmem:[%s701_s13] sm:$0x3] %v205_v39  ;;  %345 = vst [vmem:[%s701_s13 + $0x2] sm:$0x3] %v214_v40 }
  0x6d   : > { %346 = vst [vmem:[%s701_s13 + $0x4] sm:$0x3] %v225_v41 }
  0x6e   : > { %473 = shalt.err (!%p470_p9)
}
  0x6f   : > { %s474_s13 = scalar_lea.hbm %s713_s1, 128  ;;  %s478_s27 = scalar_lea.hbm %s767_s2, 256 }
  0x70   : > { %p475_p7 = scmp.ne.s32.totalorder %s713_s1, %s474_s13  ;;  %p479_p4 = scmp.lt.u32.totalorder %s713_s1, %s767_s2 }
  0x71   : > { %p480_p5 = scmp.lt.u32.totalorder %s478_s27, %s474_s13  ;;  %p482_p11 = scmp.lt.u32.totalorder %s474_s13, %s713_s1 }
  0x72   : > { %p476_p13 = pnand %p475_p7, %p780_p12 }
  0x73   : > { %p481_p8 = por %p480_p5, %p479_p4 }
  0x74   : > { %p477_p1 = pneg %p476_p13 }
  0x75   : > { %p483_p0 = por %p482_p11, %p481_p8 }
  0x77   : > { %p484_p3 = pnand %p483_p0, %p477_p1 }
  0x79   : > { %487 = shalt.err (!%p484_p3)
}
  0x7a   : > { %s550_s6 = smov 32   ;;  %s551_s7 = smov 2  }
  0x7b   : > { %356 = dma.vmem_to_hbm [thread:$0]  (%p780_p12), %s708_s14, 128, %s713_s1, %s233_s22, %s550_s6, %s550_s6, %s551_s7  }
  0x7c PF: > { %s262_s9 = sand.u32 1, %s524_s19   ;;  %p781_p10 = scmp.ne.s32.totalorder %s775_s5, 0 }
  0x7d   : > { %p782_p2 = scmp.ge.s32.totalorder %s544_s24, 2  ;;  %s263_s10 = scalar_lea.sflag [#allocation6], %s262_s9 }
  0x7f   : > { %p363_p6 = pnand %p782_p2, %p781_p10 }
  0x81   : > { %519 = dma.done.wait (!%p363_p6), %s263_s10, 128  }
  0x82   : > { %521 = vsyncadd (!%p363_p6), %s263_s10, 4294967168  ;;  %s22_s24 = sadd.s32 1, %s544_s24   ;;  %s783_s3 = sld [smem:[#allocation11_spill]] }
  0x83   : > { %p19_p9 = scmp.ge.s32.totalorder %s22_s24, 4   ;;  %s784_s19 = smov %s528_s20 }
  0x84   : > { %s785_s20 = smov %s532_s21  ;;  %s786_s21 = smov %s635_s4 }
  0x85   : > { %s787_s22 = smov %s540_s23  ;;  %21 = sbr.rel (!%p19_p9) target bundleno = 18 (0x12), region = 72 }
  0x88   : > { %s788_s23 = smov %s783_s3 }
  0x8c   :  { %268 = vsyncpa [#allocation5], 1 }
  0x8d   :  { %270 = vsyncpa [#allocation5 + $0x1], 1 }
  0x8e   :  { %271 = vsyncpa [#allocation6], 1 }
  0x8f   :  { %273 = vsyncpa [#allocation6 + $0x1], 1 }

</bundles_post_ra>
